<compile_context>
chip_gen: v6e
topology: v6e:2x2x1
jax: 0.10.0
libtpu: 0.0.40
codegen_flags: <defaults>
</compile_context>

<pallas_src>
import jax
import jax.numpy as jnp
from jax.experimental import pallas as pl
from jax.experimental.pallas import tpu as pltpu


# --------------------------------------------------------------------------
# Kernel body: single direct HBM -> HBM DMA copy (identity).
# Both refs live in memory_space=pl.ANY, so no VMEM staging occurs.
# --------------------------------------------------------------------------
def _dma_identity_kernel(x_hbm_ref, o_hbm_ref, copy_sem):
    cp = pltpu.make_async_copy(x_hbm_ref, o_hbm_ref, copy_sem)
    cp.start()
    cp.wait()


# Widest lane we will use for the lane-dense 2-D view (bytes per row budget
# keeps DMA descriptors contiguous without pathological single-row shapes).
_MAX_ROW_BYTES = 64 * 1024


def _lane_dense_view_shape(n, itemsize):
    """Return a (rows, lane) factorization of `n` with lane a multiple of 128,
    or None if no such factorization exists."""
    if n % 128 != 0:
        return None
    lane = 128
    while (n % (lane * 2) == 0) and (lane * 2 * itemsize <= _MAX_ROW_BYTES):
        lane *= 2
    return (n // lane, lane)


def _identity_copy_pallas(x):
    """Explicit Pallas copy of `x` (demonstration path for nn.Identity).

    Always materializes a fresh buffer: lane-dense 2-D view when the element
    count allows it, otherwise a flat 1-D full-array DMA copy.
    """
    orig_shape = x.shape
    n = int(x.size)
    if n == 0:
        return x

    itemsize = jnp.dtype(x.dtype).itemsize

    view_shape = _lane_dense_view_shape(n, itemsize)
    if view_shape is None:
        view_shape = (n,)  # flat contiguous copy; DMA handles any shape.
    view = x.reshape(view_shape)

    out = pl.pallas_call(
        _dma_identity_kernel,
        out_shape=jax.ShapeDtypeStruct(view_shape, x.dtype),
        in_specs=[pl.BlockSpec(memory_space=pl.ANY)],
        out_specs=pl.BlockSpec(memory_space=pl.ANY),
        scratch_shapes=[pltpu.SemaphoreType.DMA],
        cost_estimate=pl.CostEstimate(
            flops=0,
            transcendentals=0,
            bytes_accessed=2 * n * itemsize,
        ),
    )(view)

    return out.reshape(orig_shape)


def identity(x, *, force_pallas_copy=False):
    """Pallas implementation of nn.Identity().forward(x).

    Default path returns `x` unchanged (zero-cost — the correct optimization
    for an identity op). Pass force_pallas_copy=True to exercise the direct
    HBM->HBM DMA copy kernel instead.
    """
    if not force_pallas_copy:
        return x
    return _identity_copy_pallas(x)


if __name__ == "__main__":
    key = jax.random.PRNGKey(0)
    # Small NCHW input consistent with how Identity is used inside Swin blocks.
    x = jax.random.normal(key, (2, 4, 16, 16), dtype=jnp.float32)

    # Fast path (no kernel launched): the recommended production behavior.
    y_fast = identity(x)
    assert y_fast.shape == x.shape and y_fast.dtype == x.dtype
    assert bool(jnp.all(y_fast == x))

    # Pallas kernel path: direct HBM->HBM DMA copy, verified bit-exact.
    y_kernel = identity(x, force_pallas_copy=True)
    jax.block_until_ready(y_kernel)
    assert y_kernel.shape == x.shape and y_kernel.dtype == x.dtype
    assert bool(jnp.all(y_kernel == x))

    # Shape with no multiple-of-128 factorization: still copied (1-D DMA),
    # no silent fall-through.
    x2 = jax.random.normal(jax.random.PRNGKey(0), (5, 24), dtype=jnp.float32)
    y2 = identity(x2, force_pallas_copy=True)
    jax.block_until_ready(y2)
    assert y2.shape == x2.shape and y2.dtype == x2.dtype
    assert bool(jnp.all(y2 == x2))

    print("KERNEL_OK")
</pallas_src>

<mosaic_0001>
module attributes {stable_mosaic.version = 11 : i64} {
  func.func @_dma_identity_kernel(%arg0: memref<1x2048xf32, #tpu.memory_space<any>>, %arg1: memref<1x2048xf32, #tpu.memory_space<any>>, %arg2: memref<!tpu.dma_semaphore, #tpu.memory_space<semaphore_mem>>) attributes {dimension_semantics = [], scalar_prefetch = 0 : i64, scratch_operands = 1 : i64, tpu.core_type = #tpu.core_type<tc>} {
    tpu.enqueue_dma source(%arg0 : memref<1x2048xf32, #tpu.memory_space<any>>) target(%arg1 : memref<1x2048xf32, #tpu.memory_space<any>>) target_semaphore(%arg2 : memref<!tpu.dma_semaphore, #tpu.memory_space<semaphore_mem>>)
    tpu.wait_dma2 semaphore(%arg2 : memref<!tpu.dma_semaphore, #tpu.memory_space<semaphore_mem>>) src(%arg0 : memref<1x2048xf32, #tpu.memory_space<any>>) dst(%arg1 : memref<1x2048xf32, #tpu.memory_space<any>>)
    return
  }
}

</mosaic_0001>

<bundles_post_ra>
// kernel: tpu_custom_call.1
= control target key start
LH: loop header
LB: loop body
LE: loop exit
PB: predicated region body
PF: predicated region fallthrough
CT: control target
= control target key end

     0   :  { %s28_s6 = smov [#allocation2]   ;;  %s29_s7 = smov 131072   ;;  %s47_s0 = inlined_call_operand.hbm [shape: f32[1,2048], index: 0, kind: input, shape index: {}]   ;;  %s48_s1 = inlined_call_operand.hbm [shape: f32[1,2048], index: 1, kind: output, shape index: {}]  }
   0x1   :  { %s30_s8 = smov 0  }
   0x2   :  { %12 = dma.general %s47_s0, 256, %s48_s1, %s28_s6, %s29_s7, [#allocation4], %s30_s8, 0  }
   0x3   :  { %26 = dma.done.wait [#allocation2], 256 }
   0x4   :  { %27 = vsyncadd [#allocation2], 4294967040 }
   0x5   :  { %16 = vsyncmov [#allocation2] }
   0x8   :  { %s17_s13 = vpop.sfrf %16 }
   0x9   :  { %p22_p0 = scmp.ne.s32.totalorder %s17_s13, 0 }
   0xb   :  { %21 = shalt.err (%p22_p0)  }

</bundles_post_ra>
